<compile_context>
chip_gen: v5e
topology: v5e:2x2
jax: 0.10.0
libtpu: 0.0.40
codegen_flags: <defaults>
</compile_context>

<pallas_src>
import functools

import jax
import jax.numpy as jnp
from jax.experimental import pallas as pl
from jax.experimental.pallas import tpu as pltpu

OUT_LANES = 128  # lane-dense output width (true output is 4 wide)


def _round_up(a, b):
    return pl.cdiv(a, b) * b


def dqn_kernel(x_ref, w1_ref, b1_ref, w2_ref, b2_ref, w3_ref, b3_ref, o_ref):
    # x_ref: (TB, 8) in the MXU dtype (bf16 by default); weights in MXU dtype,
    # biases f32. All matmuls accumulate in f32; epilogues stay in f32.
    mxu_dt = w1_ref.dtype

    h1 = jnp.dot(x_ref[...], w1_ref[...], preferred_element_type=jnp.float32)
    h1 = jnp.maximum(h1 + b1_ref[...], 0.0)                       # (TB, 64) f32

    h2 = jnp.dot(h1.astype(mxu_dt), w2_ref[...],
                 preferred_element_type=jnp.float32)
    h2 = jnp.maximum(h2 + b2_ref[...], 0.0)                       # (TB, 48) f32

    h3 = jnp.dot(h2.astype(mxu_dt), w3_ref[...],
                 preferred_element_type=jnp.float32)              # (TB, 128) f32
    o_ref[...] = (h3 + b3_ref[...]).astype(o_ref.dtype)


@functools.partial(jax.jit, static_argnames=("tb", "use_bf16"))
def dqn_forward(x, params, *, tb=1024, use_bf16=True):
    w1, b1, w2, b2, w3, b3 = params
    B, in_dim = x.shape
    out_dim = w3.shape[1]                       # 4

    # --- lane-dense output: pad last layer to 128 output columns (zeros) ------
    w3p = jnp.zeros((w3.shape[0], OUT_LANES), w3.dtype).at[:, :out_dim].set(w3)
    b3p = jnp.zeros((1, OUT_LANES), b3.dtype).at[:, :out_dim].set(b3)

    # --- MXU operand dtype ----------------------------------------------------
    mxu_dt = jnp.bfloat16 if use_bf16 else jnp.float32
    xc = x.astype(mxu_dt)
    w1c, w2c, w3c = w1.astype(mxu_dt), w2.astype(mxu_dt), w3p.astype(mxu_dt)

    # --- batch tiling: pad B to a multiple of the (sublane-aligned) tile ------
    b8 = max(8, _round_up(B, 8))
    TB = min(tb, b8)
    B_pad = _round_up(b8, TB)
    if B_pad != B:
        xc = jnp.pad(xc, ((0, B_pad - B), (0, 0)))
    grid = (B_pad // TB,)

    # --- cost / VMEM hints ----------------------------------------------------
    x_bytes = B_pad * in_dim * xc.dtype.itemsize
    w_bytes = sum(int(a.size) * a.dtype.itemsize
                  for a in (w1c, b1, w2c, b2, w3c, b3p))
    out_bytes = B_pad * OUT_LANES * 4
    flops = 2 * B_pad * (in_dim * w1.shape[1]
                         + w1.shape[1] * w2.shape[1]
                         + w2.shape[1] * OUT_LANES)
    cost = pl.CostEstimate(flops=flops, transcendentals=0,
                           bytes_accessed=x_bytes + w_bytes + out_bytes)
    # Double-buffered x / out blocks + resident weights + margin (fits every
    # generation's default scoped-VMEM limit by a wide margin).
    vmem_limit = int(4 * (TB * in_dim * xc.dtype.itemsize + TB * OUT_LANES * 4)
                     + 4 * w_bytes + (1 << 20))
    vmem_limit = min(vmem_limit, 32 * 1024 * 1024)

    const = lambda i: (0, 0)   # weights: same block every grid step (stay in VMEM)
    out_pad = pl.pallas_call(
        dqn_kernel,
        out_shape=jax.ShapeDtypeStruct((B_pad, OUT_LANES), jnp.float32),
        grid=grid,
        in_specs=[
            pl.BlockSpec((TB, in_dim), lambda i: (i, 0)),          # x tile
            pl.BlockSpec(w1c.shape, const),
            pl.BlockSpec(b1.shape, const),
            pl.BlockSpec(w2c.shape, const),
            pl.BlockSpec(b2.shape, const),
            pl.BlockSpec(w3c.shape, const),
            pl.BlockSpec(b3p.shape, const),
        ],
        out_specs=pl.BlockSpec((TB, OUT_LANES), lambda i: (i, 0)),
        compiler_params=pltpu.CompilerParams(
            dimension_semantics=("parallel",),
            vmem_limit_bytes=vmem_limit,
        ),
        cost_estimate=cost,
    )(xc, w1c, b1, w2c, b2, w3c, b3p)

    return out_pad[:B, :out_dim]


def init_params(key):
    # Deterministic synthetic init (uniform, matching torch.nn.Linear's
    # +-1/sqrt(fan_in) default scale). Weights stored (in, out); biases (1, out).
    dims = [(8, 64), (64, 48), (48, 4)]
    params = []
    for fan_in, fan_out in dims:
        key, kw, kb = jax.random.split(key, 3)
        bound = 1.0 / (fan_in ** 0.5)
        w = jax.random.uniform(kw, (fan_in, fan_out), jnp.float32, -bound, bound)
        b = jax.random.uniform(kb, (1, fan_out), jnp.float32, -bound, bound)
        params += [w, b]
    return params


def reference_forward(x, params, use_bf16=True):
    # Mirrors the kernel's numerics (bf16 MXU operands, f32 accumulate/epilogue).
    w1, b1, w2, b2, w3, b3 = params
    dt = jnp.bfloat16 if use_bf16 else jnp.float32
    h1 = jnp.maximum(
        jnp.dot(x.astype(dt), w1.astype(dt),
                preferred_element_type=jnp.float32) + b1, 0.0)
    h2 = jnp.maximum(
        jnp.dot(h1.astype(dt), w2.astype(dt),
                preferred_element_type=jnp.float32) + b2, 0.0)
    return jnp.dot(h2.astype(dt), w3.astype(dt),
                   preferred_element_type=jnp.float32) + b3


if __name__ == "__main__":
    key = jax.random.PRNGKey(0)
    key, kx1, kx2 = jax.random.split(key, 3)
    params = init_params(key)

    # Small aligned batch.
    B1 = 8
    x1 = jax.random.normal(kx1, (B1, 8), jnp.float32)
    out1 = jax.block_until_ready(dqn_forward(x1, params))
    ref1 = reference_forward(x1, params)
    assert out1.shape == (B1, 4), out1.shape
    assert jnp.allclose(out1, ref1, atol=1e-3, rtol=1e-3), "mismatch (B=8)"

    # Small ragged batch (exercises batch padding + slicing path).
    B2 = 37
    x2 = jax.random.normal(kx2, (B2, 8), jnp.float32)
    out2 = jax.block_until_ready(dqn_forward(x2, params))
    ref2 = reference_forward(x2, params)
    assert out2.shape == (B2, 4), out2.shape
    assert jnp.allclose(out2, ref2, atol=1e-3, rtol=1e-3), "mismatch (B=37)"

    print("KERNEL_OK")
</pallas_src>

<mosaic_0001>
module attributes {stable_mosaic.version = 11 : i64} {
  func.func @dqn_kernel(%arg0: i32, %arg1: memref<8x8xbf16, #tpu.memory_space<vmem>>, %arg2: memref<8x64xbf16, #tpu.memory_space<vmem>>, %arg3: memref<1x64xf32, #tpu.memory_space<vmem>>, %arg4: memref<64x48xbf16, #tpu.memory_space<vmem>>, %arg5: memref<1x48xf32, #tpu.memory_space<vmem>>, %arg6: memref<48x128xbf16, #tpu.memory_space<vmem>>, %arg7: memref<1x128xf32, #tpu.memory_space<vmem>>, %arg8: memref<8x128xf32, #tpu.memory_space<vmem>>) attributes {dimension_semantics = [#tpu.dimension_semantics<parallel>], iteration_bounds = array<i64: 1>, scalar_prefetch = 0 : i64, scratch_operands = 0 : i64, tpu.core_type = #tpu.core_type<tc>, window_params = [{transform_indices = @transform_0, window_bounds = array<i64: 8, 8>}, {pipeline_mode = #tpu.pipeline_mode<synchronous>, transform_indices = @transform_1, window_bounds = array<i64: 8, 64>}, {pipeline_mode = #tpu.pipeline_mode<synchronous>, transform_indices = @transform_2, window_bounds = array<i64: 1, 64>}, {pipeline_mode = #tpu.pipeline_mode<synchronous>, transform_indices = @transform_3, window_bounds = array<i64: 64, 48>}, {pipeline_mode = #tpu.pipeline_mode<synchronous>, transform_indices = @transform_4, window_bounds = array<i64: 1, 48>}, {pipeline_mode = #tpu.pipeline_mode<synchronous>, transform_indices = @transform_5, window_bounds = array<i64: 48, 128>}, {pipeline_mode = #tpu.pipeline_mode<synchronous>, transform_indices = @transform_6, window_bounds = array<i64: 1, 128>}, {transform_indices = @transform_7, window_bounds = array<i64: 8, 128>}]} {
    %c0 = arith.constant 0 : index
    %c0_0 = arith.constant 0 : index
    %0 = vector.load %arg1[%c0, %c0_0] : memref<8x8xbf16, #tpu.memory_space<vmem>>, vector<8x8xbf16>
    %c0_1 = arith.constant 0 : index
    %c0_2 = arith.constant 0 : index
    %1 = vector.load %arg2[%c0_1, %c0_2] : memref<8x64xbf16, #tpu.memory_space<vmem>>, vector<8x64xbf16>
    %cst = arith.constant dense<0.000000e+00> : vector<8x64xf32>
    %2 = tpu.matmul %0, %1, %cst {dimension_numbers = #tpu.dot_dimension_numbers<[1], [0], [0], [1], [0, 0, 1, 1], [], []>} : vector<8x8xbf16>, vector<8x64xbf16>, vector<8x64xf32> -> vector<8x64xf32>
    %c0_3 = arith.constant 0 : index
    %c0_4 = arith.constant 0 : index
    %3 = vector.load %arg3[%c0_3, %c0_4] : memref<1x64xf32, #tpu.memory_space<vmem>>, vector<1x64xf32>
    %4 = vector.broadcast %3 : vector<1x64xf32> to vector<8x64xf32>
    %5 = arith.addf %2, %4 : vector<8x64xf32>
    %cst_5 = arith.constant 0.000000e+00 : f32
    %6 = vector.broadcast %cst_5 : f32 to vector<8x64xf32>
    %7 = arith.maximumf %5, %6 : vector<8x64xf32>
    %8 = arith.truncf %7 : vector<8x64xf32> to vector<8x64xbf16>
    %c0_6 = arith.constant 0 : index
    %c0_7 = arith.constant 0 : index
    %9 = vector.load %arg4[%c0_6, %c0_7] : memref<64x48xbf16, #tpu.memory_space<vmem>>, vector<64x48xbf16>
    %cst_8 = arith.constant dense<0.000000e+00> : vector<8x48xf32>
    %10 = tpu.matmul %8, %9, %cst_8 {dimension_numbers = #tpu.dot_dimension_numbers<[1], [0], [0], [1], [0, 0, 1, 1], [], []>} : vector<8x64xbf16>, vector<64x48xbf16>, vector<8x48xf32> -> vector<8x48xf32>
    %c0_9 = arith.constant 0 : index
    %c0_10 = arith.constant 0 : index
    %11 = vector.load %arg5[%c0_9, %c0_10] : memref<1x48xf32, #tpu.memory_space<vmem>>, vector<1x48xf32>
    %12 = vector.broadcast %11 : vector<1x48xf32> to vector<8x48xf32>
    %13 = arith.addf %10, %12 : vector<8x48xf32>
    %cst_11 = arith.constant 0.000000e+00 : f32
    %14 = vector.broadcast %cst_11 : f32 to vector<8x48xf32>
    %15 = arith.maximumf %13, %14 : vector<8x48xf32>
    %16 = arith.truncf %15 : vector<8x48xf32> to vector<8x48xbf16>
    %c0_12 = arith.constant 0 : index
    %c0_13 = arith.constant 0 : index
    %17 = vector.load %arg6[%c0_12, %c0_13] : memref<48x128xbf16, #tpu.memory_space<vmem>>, vector<48x128xbf16>
    %cst_14 = arith.constant dense<0.000000e+00> : vector<8x128xf32>
    %18 = tpu.matmul %16, %17, %cst_14 {dimension_numbers = #tpu.dot_dimension_numbers<[1], [0], [0], [1], [0, 0, 1, 1], [], []>} : vector<8x48xbf16>, vector<48x128xbf16>, vector<8x128xf32> -> vector<8x128xf32>
    %c0_15 = arith.constant 0 : index
    %c0_16 = arith.constant 0 : index
    %19 = vector.load %arg7[%c0_15, %c0_16] : memref<1x128xf32, #tpu.memory_space<vmem>>, vector<1x128xf32>
    %20 = vector.broadcast %19 : vector<1x128xf32> to vector<8x128xf32>
    %21 = arith.addf %18, %20 : vector<8x128xf32>
    %c0_17 = arith.constant 0 : index
    %c0_18 = arith.constant 0 : index
    %22 = vector.load %arg8[%c0_17, %c0_18] : memref<8x128xf32, #tpu.memory_space<vmem>>, vector<8x128xf32>
    tpu.vector_store %arg8[%c0_17, %c0_18], %21 {strides = array<i32>} : memref<8x128xf32, #tpu.memory_space<vmem>>, vector<8x128xf32>,
    return
  }
  func.func @transform_0(%arg0: i32) -> (i32, i32) {
    %c0_i32 = arith.constant 0 : i32
    %c0_i32_0 = arith.constant 0 : i32
    return %arg0, %c0_i32 : i32, i32
  }
  func.func @transform_1(%arg0: i32) -> (i32, i32) {
    %c0_i32 = arith.constant 0 : i32
    %c0_i32_0 = arith.constant 0 : i32
    %c0_i32_1 = arith.constant 0 : i32
    return %c0_i32, %c0_i32_0 : i32, i32
  }
  func.func @transform_2(%arg0: i32) -> (i32, i32) {
    %c0_i32 = arith.constant 0 : i32
    %c0_i32_0 = arith.constant 0 : i32
    %c0_i32_1 = arith.constant 0 : i32
    return %c0_i32, %c0_i32_0 : i32, i32
  }
  func.func @transform_3(%arg0: i32) -> (i32, i32) {
    %c0_i32 = arith.constant 0 : i32
    %c0_i32_0 = arith.constant 0 : i32
    %c0_i32_1 = arith.constant 0 : i32
    return %c0_i32, %c0_i32_0 : i32, i32
  }
  func.func @transform_4(%arg0: i32) -> (i32, i32) {
    %c0_i32 = arith.constant 0 : i32
    %c0_i32_0 = arith.constant 0 : i32
    %c0_i32_1 = arith.constant 0 : i32
    return %c0_i32, %c0_i32_0 : i32, i32
  }
  func.func @transform_5(%arg0: i32) -> (i32, i32) {
    %c0_i32 = arith.constant 0 : i32
    %c0_i32_0 = arith.constant 0 : i32
    %c0_i32_1 = arith.constant 0 : i32
    return %c0_i32, %c0_i32_0 : i32, i32
  }
  func.func @transform_6(%arg0: i32) -> (i32, i32) {
    %c0_i32 = arith.constant 0 : i32
    %c0_i32_0 = arith.constant 0 : i32
    %c0_i32_1 = arith.constant 0 : i32
    return %c0_i32, %c0_i32_0 : i32, i32
  }
  func.func @transform_7(%arg0: i32) -> (i32, i32) {
    %c0_i32 = arith.constant 0 : i32
    %c0_i32_0 = arith.constant 0 : i32
    return %arg0, %c0_i32 : i32, i32
  }
}

</mosaic_0001>

<bundles_post_ra>
// kernel: dqn_forward.1
= control target key start
LH: loop header
LB: loop body
LE: loop exit
PB: predicated region body
PF: predicated region fallthrough
CT: control target
= control target key end

     0   :  { %vm37_vm0 = vcmask 1043456   ;;  %vm33_vm1 = vcmask 64512   ;;  %vm92_vm2 = vcmask 523264   ;;  %vm139_vm3 = vcmask 392192   ;;  %s281_s1 = inlined_call_operand.vmem [shape: bf16[8,64], index: 1, kind: input, shape index: {}]   ;;  %s282_s0 = inlined_call_operand.vmem [shape: bf16[8,8], index: 0, kind: input, shape index: {}]   ;;  %s283_s3 = inlined_call_operand.vmem [shape: bf16[64,48], index: 3, kind: input, shape index: {}]   ;;  %s284_s2 = inlined_call_operand.vmem [shape: f32[1,64], index: 2, kind: input, shape index: {}]   ;;  %s285_s4 = inlined_call_operand.vmem [shape: f32[1,48], index: 4, kind: input, shape index: {}]   ;;  %s286_s5 = inlined_call_operand.vmem [shape: bf16[48,128], index: 5, kind: input, shape index: {}]   ;;  %s287_s6 = inlined_call_operand.vmem [shape: f32[1,128], index: 6, kind: input, shape index: {}]   ;;  %s288_s7 = inlined_call_operand.vmem [shape: f32[8,128], index: 7, kind: output, shape index: {}]  }
   0x1   :  { %v28_v0 = vld [vmem:[%s281_s1] sm:$0xf]  ;;  %v195_v1 = vld [vmem:[%s283_s3 + $0x18] sm:$0xff]  ;;  %v194_v4 = vld [vmem:[%s283_s3 + $0x10] sm:$0xff] }
   0x2   :  { %v39_v2 = vsel %vm37_vm0, %v28_v0, 0  ;;  %v27_v3 = vld [vmem:[%s282_s0] sm:$0xf]  ;;  %100 = vmatpush.bf16.msra.mxu1 %v195_v1  ;;  %v193_v5 = vld [vmem:[%s283_s3 + $0x8] sm:$0xff]  ;;  %v198_v7 = vld [vmem:[%s286_s5 + $0x10] sm:$0xff] }
   0x3   :  { %48 = vmatpush.bf16.msra.mxu0 %v39_v2  ;;  %v192_v6 = vld [vmem:[%s283_s3] sm:$0xff]  ;;  %148 = vmatpush.bf16.msra.mxu2 %v198_v7  ;;  %v197_v14 = vld [vmem:[%s286_s5 + $0x8] sm:$0xff] }
   0x4   :  { %v199_v8 = vld [vmem:[%s284_s2] ss:$0 sm:$0xff] }
   0x5   :  { %v196_v15 = vld [vmem:[%s286_s5] sm:$0xff] }
   0x6   :  { %161 = vmatmul.msk.bf16.vlgmr.msra.gmra.mxu0 %vm33_vm1, %v27_v3  ;;  %101 = vmatpush.bf16.msra.mxu1 %v194_v4  ;;  %v200_v16 = vld [vmem:[%s285_s4] ss:$0 sm:$0xff] }
   0x7   :  { %149 = vmatpush.bf16.msra.mxu2 %v197_v14  ;;  %v201_v22 = vld [vmem:[%s287_s6] ss:$0 sm:$0xff] }
   0xa   :  { %102 = vmatpush.bf16.msra.mxu1 %v193_v5 }
   0xb   :  { %150 = vmatpush.bf16.msra.mxu2 %v196_v15 }
   0xe   :  { %103 = vmatpush.bf16.msra.mxu1 %v192_v6 }
  0x83   :  { %v50_v9 = vpop.f32.mrf.mxu0 }
  0x84   :  { %v51_v10 = vadd.f32 %v199_v8, %v50_v9 }
  0x86   :  { %v54_v11 = vmax.f32 %v51_v10, 0.0 }
  0x88   :  { %v55_v12 = vpack.c.bf16 %v54_v11, %v54_v11 }
  0x8a   :  { %178 = vmatmul.msk.bf16.vlgmr.msra.gmra.mxu1 %vm92_vm2, %v55_v12 }
  0x8b   :  { %v52_v13 = vpop.f32.mrf.mxu0 }
 0x107   :  { %v105_v17 = vpop.f32.mrf.mxu1 }
 0x108   :  { %v106_v18 = vadd.f32 %v200_v16, %v105_v17 }
 0x10a   :  { %v109_v19 = vmax.f32 %v106_v18, 0.0 }
 0x10c   :  { %v110_v20 = vpack.c.bf16 %v109_v19, %v109_v19 }
 0x10e   :  { %191 = vmatmul.msk.bf16.vlgmr.msra.gmra.mxu2 %vm139_vm3, %v110_v20 }
 0x10f   :  { %v107_v21 = vpop.f32.mrf.mxu1 }
 0x191   :  { %v152_v23 = vpop.f32.mrf.mxu2 }
 0x192   :  { %v153_v24 = vadd.f32 %v201_v22, %v152_v23 }
 0x194   :  { %156 = vst [vmem:[%s288_s7] sm:$0xff] %v153_v24 }
 0x199   :  { %v154_v25 = vpop.f32.mrf.mxu2 }

</bundles_post_ra>
